<compile_context>
chip_gen: v7x
topology: tpu7x:2x2x1
jax: 0.10.0
libtpu: 0.0.40
codegen_flags: <defaults>
</compile_context>

<pallas_src>
import functools

import jax
import jax.numpy as jnp
import numpy as np
from jax import lax
from jax.experimental import pallas as pl
from jax.experimental.pallas import tpu as pltpu


# ---------------------------------------------------------------------------
# VMEM budget / tile selection
# ---------------------------------------------------------------------------
_BLOCK_BUFFER_FACTOR = 7      # x input (2 bufs) + y output (2 bufs) + ~3 temporaries
_F32_BYTES = 4


def _vmem_budget_bytes():
    """~75% of physical VMEM: ~96 MiB on v5e/v6e (128 MiB), ~48 MiB on v7x (64 MiB)."""
    cap = None
    try:
        cap = getattr(pltpu.get_tpu_info(), "vmem_capacity_bytes", None)
    except Exception:
        cap = None
    if not cap:
        cap = 64 * 1024 * 1024            # conservative fallback (v7x per-core VMEM)
    return int(cap) * 3 // 4


def _feature_tile_candidates(D):
    if D % 128 == 0:
        return [td for td in range(D, 0, -128) if D % td == 0]
    return [D]                            # full-width block (valid: equals full dim)


def _pick_tiles(B, D, budget_bytes):
    """Returns (td, tb).  tb == B  => single-phase (full batch per feature tile)."""
    cands = _feature_tile_candidates(D)
    blk = _BLOCK_BUFFER_FACTOR * _F32_BYTES
    for td in cands:                      # largest lane-aligned feature tile that fits
        if blk * B * td <= budget_bytes:
            return td, B
    td = cands[-1]                        # narrowest lane-aligned feature tile
    for tb in range(B, 0, -1):            # largest batch tile: divisor of B, multiple of 8
        if B % tb == 0 and tb % 8 == 0 and blk * tb * td <= budget_bytes:
            return td, tb
    return td, B                          # no legal batch tile -> single-phase fallback


# ---------------------------------------------------------------------------
# Pallas kernels
# ---------------------------------------------------------------------------
def _direct_fused_kernel(eps, inv_b, x_ref, lg_ref, beta_ref,
                         y_ref, mean_ref, var_ref):
    """Single-phase: exact batch stats + folded affine on one (B, td) tile."""
    x = x_ref[...]                                      # (B, td)
    lg = lg_ref[...]                                    # (1, td)
    mean = jnp.sum(x, axis=0, keepdims=True) * inv_b
    xc = x - mean
    var = jnp.sum(xc * xc, axis=0, keepdims=True) * inv_b + eps
    s = jnp.exp(lg) * lax.rsqrt(var)                    # per-feature scale
    y_ref[...] = x * s + (beta_ref[...] - s * mean)     # folded scale/shift
    mean_ref[...] = mean
    var_ref[...] = var


def _stats_kernel(eps, inv_b, x_ref, mean_ref, var_ref):
    """Two-phase, phase 1: accumulate sum / sum-of-squares over batch tiles."""
    b = pl.program_id(1)

    @pl.when(b == 0)
    def _():
        mean_ref[...] = jnp.zeros_like(mean_ref)
        var_ref[...] = jnp.zeros_like(var_ref)

    x = x_ref[...]                                      # (tb, td)
    mean_ref[...] += jnp.sum(x, axis=0, keepdims=True)
    var_ref[...] += jnp.sum(x * x, axis=0, keepdims=True)

    @pl.when(b == pl.num_programs(1) - 1)
    def _():
        m = mean_ref[...] * inv_b
        mean_ref[...] = m
        # TODO(synk): sum-of-squares variance loses precision if |mean| >> std.
        var_ref[...] = var_ref[...] * inv_b - m * m + eps


def _affine_direct_kernel(x_ref, lg_ref, beta_ref, mean_ref, var_ref, y_ref):
    """y = exp(lg) * (x - mean) / sqrt(var) + beta   (folded scale/shift)."""
    lg = lg_ref[...]
    var = var_ref[...]
    s = jnp.exp(lg) * lax.rsqrt(var)
    y_ref[...] = x_ref[...] * s + (beta_ref[...] - s * mean_ref[...])


def _affine_inverse_kernel(x_ref, lg_ref, beta_ref, mean_ref, var_ref, y_ref):
    """y = (x - beta) * exp(-lg) * sqrt(var) + mean   (folded scale/shift)."""
    lg = lg_ref[...]
    var = var_ref[...]
    s = jnp.sqrt(var) * jnp.exp(-lg)
    y_ref[...] = x_ref[...] * s + (mean_ref[...] - beta_ref[...] * s)


# ---------------------------------------------------------------------------
# Module wrapper (mirrors the PyTorch BatchNormFlow forward semantics)
# ---------------------------------------------------------------------------
class BatchNormFlow:
    def __init__(self, num_inputs, momentum=0.0, eps=1e-5, max_block_bytes=None):
        self.num_inputs = num_inputs
        self.momentum = momentum
        self.eps = eps
        # trainable parameters (zero-initialized like the PyTorch module); kept
        # 2-D (1, D) so the feature axis is the lane axis inside the kernels.
        self.log_gamma = jnp.zeros((1, num_inputs), jnp.float32)
        self.beta = jnp.zeros((1, num_inputs), jnp.float32)
        # buffers
        self.running_mean = jnp.zeros((num_inputs,), jnp.float32)
        self.running_var = jnp.ones((num_inputs,), jnp.float32)
        # batch stats populated by a 'direct' pass (used by 'inverse')
        self.batch_mean = None
        self.batch_var = None
        # VMEM budgets: compiler limit = generation budget; tile budget may be
        # further capped (used in tests to force the two-phase path).
        self._vmem_budget = _vmem_budget_bytes()
        self._tile_budget = (self._vmem_budget if max_block_bytes is None
                             else min(self._vmem_budget, int(max_block_bytes)))

    def _compiler_params(self, dims):
        return pltpu.CompilerParams(dimension_semantics=dims,
                                    vmem_limit_bytes=self._vmem_budget)

    def __call__(self, inputs, mode='direct'):
        B, D = inputs.shape
        assert D == self.num_inputs
        td, tb = _pick_tiles(B, D, self._tile_budget)
        nd, nb = D // td, B // tb
        single_phase = (tb == B)

        # 2-D grid specs (feature axis first = "parallel", batch axis last)
        row2 = pl.BlockSpec((1, td), lambda j, b: (0, j))
        mat2 = pl.BlockSpec((tb, td), lambda j, b: (b, j))
        # NOTE: per-tile compute is trivial vs DMA, so default double-buffering
        # suffices; pl.Buffered(3) only if a profile shows exposed DMA.

        if mode == 'direct':
            if single_phase:
                # one fused pallas_call: exact stats + normalization
                row1 = pl.BlockSpec((1, td), lambda j: (0, j))
                mat1 = pl.BlockSpec((B, td), lambda j: (0, j))
                kernel = functools.partial(_direct_fused_kernel,
                                           float(self.eps), 1.0 / B)
                y, bm, bv = pl.pallas_call(
                    kernel,
                    grid=(nd,),
                    in_specs=[mat1, row1, row1],
                    out_specs=(mat1, row1, row1),
                    out_shape=(
                        jax.ShapeDtypeStruct((B, D), jnp.float32),
                        jax.ShapeDtypeStruct((1, D), jnp.float32),
                        jax.ShapeDtypeStruct((1, D), jnp.float32),
                    ),
                    compiler_params=self._compiler_params(("parallel",)),
                )(inputs, self.log_gamma, self.beta)
            else:
                # two-phase batch-tiled path (large B / small VMEM): stats then affine
                stats = functools.partial(_stats_kernel, float(self.eps), 1.0 / B)
                bm, bv = pl.pallas_call(
                    stats,
                    grid=(nd, nb),
                    in_specs=[mat2],
                    out_specs=(row2, row2),
                    out_shape=(
                        jax.ShapeDtypeStruct((1, D), jnp.float32),
                        jax.ShapeDtypeStruct((1, D), jnp.float32),
                    ),
                    compiler_params=self._compiler_params(("parallel", "arbitrary")),
                )(inputs)
                y = pl.pallas_call(
                    _affine_direct_kernel,
                    grid=(nd, nb),
                    in_specs=[mat2, row2, row2, row2, row2],
                    out_specs=mat2,
                    out_shape=jax.ShapeDtypeStruct((B, D), jnp.float32),
                    compiler_params=self._compiler_params(("parallel", "parallel")),
                )(inputs, self.log_gamma, self.beta, bm, bv)

            # functional equivalent of the PyTorch in-place buffer updates
            self.batch_mean = bm
            self.batch_var = bv
            m = self.momentum
            self.running_mean = self.running_mean * m + bm.reshape(-1) * (1.0 - m)
            self.running_var = self.running_var * m + bv.reshape(-1) * (1.0 - m)
            # log-det: tiny (1, D) reduction, negligible vs (B, D) HBM traffic
            logdet = jnp.sum(self.log_gamma - 0.5 * jnp.log(bv), axis=-1).reshape(1)
            return y, logdet

        else:  # 'inverse'
            assert self.batch_mean is not None, "run a 'direct' pass first"
            y = pl.pallas_call(
                _affine_inverse_kernel,
                grid=(nd, nb),
                in_specs=[mat2, row2, row2, row2, row2],
                out_specs=mat2,
                out_shape=jax.ShapeDtypeStruct((B, D), jnp.float32),
                compiler_params=self._compiler_params(("parallel", "parallel")),
            )(inputs, self.log_gamma, self.beta, self.batch_mean, self.batch_var)
            logdet = jnp.sum(-self.log_gamma + 0.5 * jnp.log(self.batch_var),
                             axis=-1).reshape(1)
            return y, logdet


# ---------------------------------------------------------------------------
# Pure-JAX references (mirror the PyTorch forward) for sanity checks.
# ---------------------------------------------------------------------------
def _reference_direct(x, log_gamma, beta, eps):
    mean = x.mean(0, keepdims=True)
    var = ((x - mean) ** 2).mean(0, keepdims=True) + eps
    x_hat = (x - mean) / jnp.sqrt(var)
    y = jnp.exp(log_gamma) * x_hat + beta
    logdet = jnp.sum(log_gamma - 0.5 * jnp.log(var), axis=-1).reshape(1)
    return y, logdet, mean, var


def _reference_inverse(x, log_gamma, beta, mean, var):
    x_hat = (x - beta) / jnp.exp(log_gamma)
    y = x_hat * jnp.sqrt(var) + mean
    logdet = jnp.sum(-log_gamma + 0.5 * jnp.log(var), axis=-1).reshape(1)
    return y, logdet


if __name__ == "__main__":
    # small shapes implied by the forward: inputs is (batch, num_inputs)
    batch, num_inputs = 64, 256
    k1, k2, k3 = jax.random.split(jax.random.PRNGKey(0), 3)
    x = jax.random.normal(k1, (batch, num_inputs), jnp.float32)
    log_gamma = 0.1 * jax.random.normal(k2, (1, num_inputs), jnp.float32)
    beta = 0.1 * jax.random.normal(k3, (1, num_inputs), jnp.float32)

    def check(net, rtol, atol):
        net.log_gamma = log_gamma
        net.beta = beta
        # direct pass
        y, logdet = net(x, mode='direct')
        y = jax.block_until_ready(y)
        logdet = jax.block_until_ready(logdet)
        y_ref, ld_ref, mean_ref, var_ref = _reference_direct(x, log_gamma, beta, net.eps)
        assert y.shape == (batch, num_inputs) and logdet.shape == (1,)
        np.testing.assert_allclose(np.asarray(y), np.asarray(y_ref), rtol=rtol, atol=atol)
        np.testing.assert_allclose(np.asarray(logdet), np.asarray(ld_ref), rtol=rtol, atol=atol)
        np.testing.assert_allclose(np.asarray(net.batch_mean), np.asarray(mean_ref),
                                   rtol=rtol, atol=atol)
        np.testing.assert_allclose(np.asarray(net.batch_var), np.asarray(var_ref),
                                   rtol=rtol, atol=atol)
        # inverse pass (round-trip)
        x_rec, ld_inv = net(y, mode='inverse')
        x_rec = jax.block_until_ready(x_rec)
        _, ld_inv_ref = _reference_inverse(y_ref, log_gamma, beta, mean_ref, var_ref)
        np.testing.assert_allclose(np.asarray(x_rec), np.asarray(x), rtol=1e-4, atol=1e-4)
        np.testing.assert_allclose(np.asarray(ld_inv), np.asarray(ld_inv_ref),
                                   rtol=rtol, atol=atol)

    # 1) default path: whole (B, D) fits the VMEM budget -> single-phase, 1 grid step
    check(BatchNormFlow(num_inputs), rtol=1e-5, atol=1e-5)

    # 2) force the two-phase batch-tiled path (the large-B / v7x fallback) by capping
    #    the tile budget below even a (B, 128) single-phase block.
    check(BatchNormFlow(num_inputs, max_block_bytes=200_000), rtol=1e-4, atol=1e-4)

    print("KERNEL_OK")
</pallas_src>

<mosaic_0001>
module attributes {stable_mosaic.version = 11 : i64} {
  func.func @_direct_fused_kernel(%arg0: i32, %arg1: memref<64x256xf32, #tpu.memory_space<vmem>>, %arg2: memref<1x256xf32, #tpu.memory_space<vmem>>, %arg3: memref<1x256xf32, #tpu.memory_space<vmem>>, %arg4: memref<64x256xf32, #tpu.memory_space<vmem>>, %arg5: memref<1x256xf32, #tpu.memory_space<vmem>>, %arg6: memref<1x256xf32, #tpu.memory_space<vmem>>) attributes {dimension_semantics = [#tpu.dimension_semantics<parallel>], iteration_bounds = array<i64: 1>, scalar_prefetch = 0 : i64, scratch_operands = 0 : i64, tpu.core_type = #tpu.core_type<tc>, window_params = [{transform_indices = @transform_0, window_bounds = array<i64: 64, 256>}, {transform_indices = @transform_1, window_bounds = array<i64: 1, 256>}, {transform_indices = @transform_2, window_bounds = array<i64: 1, 256>}, {transform_indices = @transform_3, window_bounds = array<i64: 64, 256>}, {transform_indices = @transform_4, window_bounds = array<i64: 1, 256>}, {transform_indices = @transform_5, window_bounds = array<i64: 1, 256>}]} {
    %c0 = arith.constant 0 : index
    %c0_0 = arith.constant 0 : index
    %0 = vector.load %arg1[%c0, %c0_0] : memref<64x256xf32, #tpu.memory_space<vmem>>, vector<64x256xf32>
    %c0_1 = arith.constant 0 : index
    %c0_2 = arith.constant 0 : index
    %1 = vector.load %arg2[%c0_1, %c0_2] : memref<1x256xf32, #tpu.memory_space<vmem>>, vector<1x256xf32>
    %cst = arith.constant dense<0.000000e+00> : vector<256xf32>
    %2 = vector.multi_reduction <add>, %0, %cst [0] : vector<64x256xf32> to vector<256xf32>
    %3 = vector.shape_cast %2 : vector<256xf32> to vector<1x256xf32>
    %cst_3 = arith.constant 1.562500e-02 : f32
    %4 = vector.broadcast %cst_3 : f32 to vector<1x256xf32>
    %5 = arith.mulf %3, %4 : vector<1x256xf32>
    %6 = vector.broadcast %5 : vector<1x256xf32> to vector<64x256xf32>
    %7 = arith.subf %0, %6 : vector<64x256xf32>
    %8 = arith.mulf %7, %7 : vector<64x256xf32>
    %cst_4 = arith.constant dense<0.000000e+00> : vector<256xf32>
    %9 = vector.multi_reduction <add>, %8, %cst_4 [0] : vector<64x256xf32> to vector<256xf32>
    %10 = vector.shape_cast %9 : vector<256xf32> to vector<1x256xf32>
    %cst_5 = arith.constant 1.562500e-02 : f32
    %11 = vector.broadcast %cst_5 : f32 to vector<1x256xf32>
    %12 = arith.mulf %10, %11 : vector<1x256xf32>
    %cst_6 = arith.constant 9.99999974E-6 : f32
    %13 = vector.broadcast %cst_6 : f32 to vector<1x256xf32>
    %14 = arith.addf %12, %13 : vector<1x256xf32>
    %15 = math.exp %1 : vector<1x256xf32>
    %16 = math.rsqrt %14 : vector<1x256xf32>
    %17 = arith.mulf %15, %16 : vector<1x256xf32>
    %18 = vector.broadcast %17 : vector<1x256xf32> to vector<64x256xf32>
    %19 = arith.mulf %0, %18 : vector<64x256xf32>
    %c0_7 = arith.constant 0 : index
    %c0_8 = arith.constant 0 : index
    %20 = vector.load %arg3[%c0_7, %c0_8] : memref<1x256xf32, #tpu.memory_space<vmem>>, vector<1x256xf32>
    %21 = arith.mulf %17, %5 : vector<1x256xf32>
    %22 = arith.subf %20, %21 : vector<1x256xf32>
    %23 = vector.broadcast %22 : vector<1x256xf32> to vector<64x256xf32>
    %24 = arith.addf %19, %23 : vector<64x256xf32>
    %c0_9 = arith.constant 0 : index
    %c0_10 = arith.constant 0 : index
    %25 = vector.load %arg4[%c0_9, %c0_10] : memref<64x256xf32, #tpu.memory_space<vmem>>, vector<64x256xf32>
    tpu.vector_store %arg4[%c0_9, %c0_10], %24 {strides = array<i32>} : memref<64x256xf32, #tpu.memory_space<vmem>>, vector<64x256xf32>,
    %c0_11 = arith.constant 0 : index
    %c0_12 = arith.constant 0 : index
    %26 = vector.load %arg5[%c0_11, %c0_12] : memref<1x256xf32, #tpu.memory_space<vmem>>, vector<1x256xf32>
    tpu.vector_store %arg5[%c0_11, %c0_12], %5 {strides = array<i32>} : memref<1x256xf32, #tpu.memory_space<vmem>>, vector<1x256xf32>,
    %c0_13 = arith.constant 0 : index
    %c0_14 = arith.constant 0 : index
    %27 = vector.load %arg6[%c0_13, %c0_14] : memref<1x256xf32, #tpu.memory_space<vmem>>, vector<1x256xf32>
    tpu.vector_store %arg6[%c0_13, %c0_14], %14 {strides = array<i32>} : memref<1x256xf32, #tpu.memory_space<vmem>>, vector<1x256xf32>,
    return
  }
  func.func @transform_0(%arg0: i32) -> (i32, i32) {
    %c0_i32 = arith.constant 0 : i32
    %c0_i32_0 = arith.constant 0 : i32
    return %c0_i32, %arg0 : i32, i32
  }
  func.func @transform_1(%arg0: i32) -> (i32, i32) {
    %c0_i32 = arith.constant 0 : i32
    %c0_i32_0 = arith.constant 0 : i32
    return %c0_i32, %arg0 : i32, i32
  }
  func.func @transform_2(%arg0: i32) -> (i32, i32) {
    %c0_i32 = arith.constant 0 : i32
    %c0_i32_0 = arith.constant 0 : i32
    return %c0_i32, %arg0 : i32, i32
  }
  func.func @transform_3(%arg0: i32) -> (i32, i32) {
    %c0_i32 = arith.constant 0 : i32
    %c0_i32_0 = arith.constant 0 : i32
    return %c0_i32, %arg0 : i32, i32
  }
  func.func @transform_4(%arg0: i32) -> (i32, i32) {
    %c0_i32 = arith.constant 0 : i32
    %c0_i32_0 = arith.constant 0 : i32
    return %c0_i32, %arg0 : i32, i32
  }
  func.func @transform_5(%arg0: i32) -> (i32, i32) {
    %c0_i32 = arith.constant 0 : i32
    %c0_i32_0 = arith.constant 0 : i32
    return %c0_i32, %arg0 : i32, i32
  }
}

</mosaic_0001>

<bundles_post_ra>
// kernel: tpu_custom_call.1
= control target key start
LH: loop header
LB: loop body
LE: loop exit
PB: predicated region body
PF: predicated region fallthrough
CT: control target
= control target key end

     0   :  { %11 = vsyncpa [#allocation3], 0  ;;  %s631_s0 = inlined_call_operand.hbm [shape: f32[64,256], index: 0, kind: input, shape index: {}]   ;;  %s632_s1 = inlined_call_operand.vmem [shape: f32[1,256], index: 1, kind: input, shape index: {}]   ;;  %s633_s2 = inlined_call_operand.vmem [shape: f32[1,256], index: 2, kind: input, shape index: {}]   ;;  %s634_s3 = inlined_call_operand.hbm [shape: f32[64,256], index: 3, kind: output, shape index: {0}]   ;;  %s635_s4 = inlined_call_operand.hbm [shape: f32[1,256], index: 4, kind: output, shape index: {1}]   ;;  %s636_s5 = inlined_call_operand.hbm [shape: f32[1,256], index: 5, kind: output, shape index: {2}]  }
   0x1   :  { %12 = vsyncpa [#allocation4], 0 }
   0x2   :  { %13 = vsyncpa [#allocation7], 0  ;;  %s429_s18 = smov [#allocation2]   ;;  %s335_s22 = scalar_lea.hbm %s631_s0, 2048 }
   0x3   :  { %s19_s19 = sshll.u32 %s429_s18, 4  ;;  %p336_p0 = scmp.ne.s32.totalorder %s631_s0, %s335_s22  ;;  %s20_s19 = int_to_ptr.vmem [resolvable:$true] %s19_s19 }
   0x4   :  { %p339_p1 = scmp.lt.u32.totalorder %s335_s22, %s631_s0 }
   0x6   :  { %p341_p2 = pnand %p339_p1, %p336_p0 }
   0x8   :  { %344 = shalt.err (!%p341_p2)
}
   0x9   :  { %s345_s27 = scalar_lea.vmem %s20_s19, 2048  ;;  %p350_p4 = scmp.lt.s32.totalorder %s20_s19, %s20_s19 }
   0xa   :  { %p346_p3 = scmp.ne.s32.totalorder %s20_s19, %s345_s27  ;;  %p351_p5 = scmp.lt.s32.totalorder %s345_s27, %s345_s27 }
   0xc   :  { %p352_p6 = por %p351_p5, %p350_p4 }
   0xe   :  { %p353_p7 = pnand %p352_p6, %p346_p3 }
  0x10   :  { %356 = shalt.err (!%p353_p7)
}
  0x11   :  { %s430_s28 = smov 256   ;;  %s431_s29 = smov 16  }
  0x12   :  { %25 = dma.hbm_to_vmem [thread:$0]  %s631_s0, 2048, %s20_s19, [#allocation3], %s430_s28, %s430_s28, %s431_s29  }
  0x13   :  { %423 = dma.done.wait [#allocation3], 2048  }
  0x14   :  { %424 = vsyncadd [#allocation3], 4294965248  ;;  %v481_v0 = vld [vmem:[#allocation2] sm:$0xff]  ;;  %v483_v1 = vld [vmem:[#allocation2 + $0x8] sm:$0xff]  ;;  %v432_v44 = vmov 1966171168   ;;  %v150_v46 = vlaneseq }
  0x15   :  { %v485_v2 = vld [vmem:[#allocation2 + $0x10] sm:$0xff]  ;;  %v487_v3 = vld [vmem:[#allocation2 + $0x18] sm:$0xff]  ;;  %v489_v4 = vld [vmem:[#allocation2 + $0x20] sm:$0xff]  ;;  %v148_v45 = vunpack.c.l.s4 %v432_v44  ;;  %s433_s0 = smov [#allocation6]  }
  0x16   :  { %v491_v5 = vld [vmem:[#allocation2 + $0x28] sm:$0xff]  ;;  %v50_v6 = vadd.f32 %v485_v2, %v481_v0  ;;  %v495_v7 = vld [vmem:[#allocation2 + $0x30] sm:$0xff]  ;;  %v63_v8 = vadd.f32 %v487_v3, %v483_v1  ;;  %v499_v9 = vld [vmem:[#allocation2 + $0x38] sm:$0xff]  ;;  %v537_v56 = vshrl.u32 %v150_v46, 7  ;;  %s296_s7 = sshll.u32 %s433_s0, 4  ;;  %vm551_vm0 = vcmp.lt.s32.totalorder %v150_v46, 256  ;;  %s297_s7 = int_to_ptr.vmem [resolvable:$true] %s296_s7 }
  0x17   :  { %v502_v11 = vld [vmem:[#allocation2 + $0x40] sm:$0xff]  ;;  %v505_v13 = vld [vmem:[#allocation2 + $0x48] sm:$0xff]  ;;  %v508_v15 = vld [vmem:[#allocation2 + $0x50] sm:$0xff]  ;;  %v149_v55 = vunpack.c.0.s8 %v148_v45  ;;  %s357_s8 = scalar_lea.vmem %s297_s7, 32  ;;  %p362_p9 = scmp.lt.s32.totalorder %s297_s7, %s297_s7 }
  0x18   :  { %v51_v10 = vadd.f32 %v50_v6, %v489_v4  ;;  %v64_v12 = vadd.f32 %v63_v8, %v491_v5  ;;  %v511_v17 = vld [vmem:[#allocation2 + $0x58] sm:$0xff]  ;;  %v514_v19 = vld [vmem:[#allocation2 + $0x60] sm:$0xff]  ;;  %v517_v21 = vld [vmem:[#allocation2 + $0x68] sm:$0xff]  ;;  %p358_p8 = scmp.ne.s32.totalorder %s297_s7, %s357_s8  ;;  %p363_p10 = scmp.lt.s32.totalorder %s357_s8, %s357_s8 }
  0x19   :  { %v520_v23 = vld [vmem:[#allocation2 + $0x70] sm:$0xff]  ;;  %v523_v25 = vld [vmem:[#allocation2 + $0x78] sm:$0xff] }
  0x1a   :  { %v52_v14 = vadd.f32 %v51_v10, %v495_v7  ;;  %v65_v16 = vadd.f32 %v64_v12, %v499_v9  ;;  %p364_p11 = por %p363_p10, %p362_p9 }
  0x1c   :  { %v53_v18 = vadd.f32 %v52_v14, %v502_v11  ;;  %v66_v20 = vadd.f32 %v65_v16, %v505_v13  ;;  %v544_v14 = vsub.s32 %v149_v55, %v537_v56  ;;  %p365_p12 = pnand %p364_p11, %p358_p8 }
  0x1e   :  { %v54_v22 = vadd.f32 %v53_v18, %v508_v15  ;;  %v67_v24 = vadd.f32 %v66_v20, %v511_v17 }
  0x20   :  { %v55_v26 = vadd.f32 %v54_v22, %v514_v19  ;;  %v68_v27 = vadd.f32 %v67_v24, %v517_v21 }
  0x22   :  { %v56_v28 = vadd.f32 %v55_v26, %v520_v23  ;;  %v69_v29 = vadd.f32 %v68_v27, %v523_v25 }
  0x24   :  { %v57_v30 = vrot.slane %v56_v28, 4  ;;  %v70_v31 = vrot.slane %v69_v29, 4 }
  0x26   :  { %v58_v32 = vadd.f32 %v57_v30, %v56_v28  ;;  %v71_v33 = vadd.f32 %v70_v31, %v69_v29 }
  0x28   :  { %v59_v34 = vrot.slane %v58_v32, 2  ;;  %v72_v35 = vrot.slane %v71_v33, 2 }
  0x2a   :  { %v60_v36 = vadd.f32 %v59_v34, %v58_v32  ;;  %v73_v37 = vadd.f32 %v72_v35, %v71_v33 }
  0x2c   :  { %v61_v38 = vrot.slane %v60_v36, 1  ;;  %v74_v39 = vrot.slane %v73_v37, 1 }
  0x2e   :  { %v62_v40 = vadd.f32 %v61_v38, %v60_v36  ;;  %v75_v41 = vadd.f32 %v74_v39, %v73_v37 }
  0x30   :  { %v76_v42 = vmul.f32 0.015625, %v62_v40  ;;  %v77_v43 = vmul.f32 0.015625, %v75_v41 }
  0x32   :  { %v78_v47 = vsub.f32 %v481_v0, %v76_v42  ;;  %v80_v48 = vsub.f32 %v485_v2, %v76_v42  ;;  %v79_v49 = vsub.f32 %v483_v1, %v77_v43  ;;  %v81_v50 = vsub.f32 %v487_v3, %v77_v43 }
  0x33   :  { %v82_v51 = vsub.f32 %v489_v4, %v76_v42  ;;  %v83_v52 = vsub.f32 %v491_v5, %v77_v43  ;;  %v84_v53 = vsub.f32 %v495_v7, %v76_v42  ;;  %v85_v54 = vsub.f32 %v499_v9, %v77_v43 }
  0x34   :  { %v94_v57 = vmul.f32 %v78_v47, %v78_v47  ;;  %v95_v58 = vmul.f32 %v79_v49, %v79_v49  ;;  %v96_v59 = vmul.f32 %v80_v48, %v80_v48  ;;  %v97_v60 = vmul.f32 %v81_v50, %v81_v50 }
  0x35   :  { %v86_v61 = vsub.f32 %v502_v11, %v76_v42  ;;  %v87_v62 = vsub.f32 %v505_v13, %v77_v43  ;;  %v98_v63 = vmul.f32 %v82_v51, %v82_v51  ;;  %v99_v6 = vmul.f32 %v83_v52, %v83_v52 }
  0x36   :  { %v88_v8 = vsub.f32 %v508_v15, %v76_v42  ;;  %v89_v10 = vsub.f32 %v511_v17, %v77_v43  ;;  %v100_v12 = vmul.f32 %v84_v53, %v84_v53  ;;  %v101_v16 = vmul.f32 %v85_v54, %v85_v54 }
  0x37   :  { %v110_v18 = vadd.f32 %v96_v59, %v94_v57  ;;  %v123_v20 = vadd.f32 %v97_v60, %v95_v58  ;;  %v193_v22 = vcombine.low %v76_v42, %v77_v43  ;;  %v90_v24 = vsub.f32 %v514_v19, %v76_v42 }
  0x38   :  { %v91_v26 = vsub.f32 %v517_v21, %v77_v43  ;;  %v102_v27 = vmul.f32 %v86_v61, %v86_v61  ;;  %v103_v28 = vmul.f32 %v87_v62, %v87_v62  ;;  %v92_v32 = vsub.f32 %v520_v23, %v76_v42 }
  0x39   :  { %v111_v29 = vadd.f32 %v110_v18, %v98_v63  ;;  %v124_v30 = vadd.f32 %v123_v20, %v99_v6  ;;  %v200_v31 = vrot.slane %v193_v22, %v544_v14  ;;  %v93_v33 = vsub.f32 %v523_v25, %v77_v43 }
  0x3a   :  { %v104_v34 = vmul.f32 %v88_v8, %v88_v8  ;;  %v105_v36 = vmul.f32 %v89_v10, %v89_v10  ;;  %v106_v40 = vmul.f32 %v90_v24, %v90_v24  ;;  %v107_v41 = vmul.f32 %v91_v26, %v91_v26 }
  0x3b   :  { %v112_v37 = vadd.f32 %v111_v29, %v100_v12  ;;  %v125_v38 = vadd.f32 %v124_v30, %v101_v16  ;;  %v556_v39 = vrot.slane %v200_v31, %v544_v14 }
  0x3d   :  { %v113_v44 = vadd.f32 %v112_v37, %v102_v27  ;;  %v126_v45 = vadd.f32 %v125_v38, %v103_v28  ;;  %258 = vst.msk [vmem:[#allocation6] sm:$0x3] %vm551_vm0, %v556_v39 }
  0x3e   :  { %368 = shalt.err (!%p365_p12)
}
  0x3f   :  { %s369_s11 = scalar_lea.hbm %s635_s4, 32 }
  0x40   :  { %p370_p13 = scmp.ne.s32.totalorder %s635_s4, %s369_s11  ;;  %p373_p0 = scmp.lt.u32.totalorder %s369_s11, %s635_s4 }
  0x42   :  { %p375_p1 = pnand %p373_p0, %p370_p13 }
  0x44   :  { %378 = shalt.err (!%p375_p1)
}
  0x45   :  { %299 = dma.vmem_to_hbm [thread:$0]  %s297_s7, 32, %s635_s4, [#allocation7]   ;;  %v108_v42 = vmul.f32 %v92_v32, %v92_v32  ;;  %v109_v43 = vmul.f32 %v93_v33, %v93_v33  ;;  %v114_v46 = vadd.f32 %v113_v44, %v104_v34  ;;  %v127_v47 = vadd.f32 %v126_v45, %v105_v36  ;;  %v49_v12 = vld [vmem:[%s632_s1] sm:$0x3] }
  0x46   :  { %v140_v22 = vmul.f32 1.442695, %v49_v12  ;;  %s434_s19 = smov [#allocation8]  }
  0x47   :  { %v115_v48 = vadd.f32 %v114_v46, %v106_v40  ;;  %v128_v49 = vadd.f32 %v127_v47, %v107_v41  ;;  %s306_s20 = sshll.u32 %s434_s19, 4  ;;  %s307_s20 = int_to_ptr.vmem [resolvable:$true] %s306_s20 }
  0x48   :  { %s379_s21 = scalar_lea.vmem %s307_s20, 32  ;;  %p384_p3 = scmp.lt.s32.totalorder %s307_s20, %s307_s20 }
  0x49   :  { %v116_v50 = vadd.f32 %v115_v48, %v108_v42  ;;  %v129_v51 = vadd.f32 %v128_v49, %v109_v43  ;;  %p380_p2 = scmp.ne.s32.totalorder %s307_s20, %s379_s21  ;;  %p385_p4 = scmp.lt.s32.totalorder %s379_s21, %s379_s21 }
  0x4b   :  { %v117_v52 = vrot.slane %v116_v50, 4  ;;  %v130_v53 = vrot.slane %v129_v51, 4  ;;  %p386_p5 = por %p385_p4, %p384_p3 }
  0x4d   :  { %v118_v54 = vadd.f32 %v117_v52, %v116_v50  ;;  %v131_v55 = vadd.f32 %v130_v53, %v129_v51  ;;  %p387_p6 = pnand %p386_p5, %p380_p2 }
  0x4f   :  { %v119_v57 = vrot.slane %v118_v54, 2  ;;  %v132_v58 = vrot.slane %v131_v55, 2 }
  0x51   :  { %v120_v59 = vadd.f32 %v119_v57, %v118_v54  ;;  %v133_v60 = vadd.f32 %v132_v58, %v131_v55 }
  0x53   :  { %v121_v61 = vrot.slane %v120_v59, 1  ;;  %v134_v62 = vrot.slane %v133_v60, 1 }
  0x55   :  { %v122_v63 = vadd.f32 %v121_v61, %v120_v59  ;;  %v135_v6 = vadd.f32 %v134_v62, %v133_v60 }
  0x57   :  { %v136_v8 = vmul.f32 0.015625, %v122_v63  ;;  %v137_v10 = vmul.f32 0.015625, %v135_v6 }
  0x59   :  { %v138_v16 = vadd.f32 1e-05, %v136_v8  ;;  %v139_v18 = vadd.f32 1e-05, %v137_v10 }
  0x5b   :  { %329 = vrsqrt.f32 %v138_v16  ;;  %v261_v20 = vcombine.low %v138_v16, %v139_v18 }
  0x5c   :  { %331 = vrsqrt.f32 %v139_v18 }
  0x5d   :  { %v268_v24 = vrot.slane %v261_v20, %v544_v14  ;;  %333 = vpow2.f32 %v140_v22 }
  0x5f   :  { %v275_v26 = vrot.slane %v268_v24, %v544_v14 }
  0x61   :  { %277 = vst.msk [vmem:[#allocation8] sm:$0x3] %vm551_vm0, %v275_v26 }
  0x62   :  { %390 = shalt.err (!%p387_p6)
}
  0x63   :  { %s391_s23 = scalar_lea.hbm %s636_s5, 32 }
  0x64   :  { %p392_p7 = scmp.ne.s32.totalorder %s636_s5, %s391_s23  ;;  %p395_p8 = scmp.lt.u32.totalorder %s391_s23, %s636_s5 }
  0x66   :  { %p397_p9 = pnand %p395_p8, %p392_p7 }
  0x68   :  { %400 = shalt.err (!%p397_p9)
}
  0x69   :  { %309 = dma.vmem_to_hbm [thread:$0]  %s307_s20, 32, %s636_s5, [#allocation7]   ;;  %v330_v27 = vpop.eup %329  ;;  %v166_v33 = vsub.s32 0, %v537_v56  ;;  %v170_v34 = vsub.s32 1, %v537_v56  ;;  %v190_v36 = vld [vmem:[%s633_s2] sm:$0x3] }
  0x6a   :  { %v332_v28 = vpop.eup %331  ;;  %s435_s2 = smov [#allocation5]  }
  0x6b   :  { %v146_v29 = vcombine.low %v330_v27, %v332_v28  ;;  %v334_v31 = vpop.eup %333  ;;  %s283_s5 = sshll.u32 %s435_s2, 4  ;;  %s284_s5 = int_to_ptr.vmem [resolvable:$true] %s283_s5 }
  0x6c   :  { %s401_s8 = scalar_lea.vmem %s284_s5, 2048  ;;  %p406_p11 = scmp.lt.s32.totalorder %s284_s5, %s284_s5 }
  0x6d   :  { %v153_v30 = vrot.slane %v146_v29, %v544_v14  ;;  %p402_p10 = scmp.ne.s32.totalorder %s284_s5, %s401_s8  ;;  %p407_p12 = scmp.lt.s32.totalorder %s401_s8, %s401_s8 }
  0x6f   :  { %v160_v32 = vrot.slane %v153_v30, %v544_v14  ;;  %p408_p13 = por %p407_p12, %p406_p11 }
  0x71   :  { %v162_v35 = vmul.f32 %v334_v31, %v160_v32  ;;  %p409_p0 = pnand %p408_p13, %p402_p10 }
  0x73   :  { %v167_v37 = vrot.slane %v162_v35, %v166_v33  ;;  %v171_v38 = vrot.slane %v162_v35, %v170_v34  ;;  %v209_v40 = vmul.f32 %v556_v39, %v162_v35 }
  0x75   :  { %v210_v41 = vsub.f32 %v190_v36, %v209_v40  ;;  %v174_v44 = vmul.f32 %v167_v37, %v481_v0  ;;  %v175_v45 = vmul.f32 %v171_v38, %v483_v1  ;;  %v176_v14 = vmul.f32 %v167_v37, %v485_v2 }
  0x76   :  { %v177_v42 = vmul.f32 %v171_v38, %v487_v3  ;;  %v178_v56 = vmul.f32 %v167_v37, %v489_v4  ;;  %v179_v43 = vmul.f32 %v171_v38, %v491_v5  ;;  %v180_v46 = vmul.f32 %v167_v37, %v495_v7 }
  0x77   :  { %v215_v47 = vrot.slane %v210_v41, %v166_v33  ;;  %v219_v48 = vrot.slane %v210_v41, %v170_v34  ;;  %v181_v49 = vmul.f32 %v171_v38, %v499_v9  ;;  %v182_v39 = vmul.f32 %v167_v37, %v502_v11 }
  0x78   :  { %v183_v0 = vmul.f32 %v171_v38, %v505_v13  ;;  %v184_v1 = vmul.f32 %v167_v37, %v508_v15  ;;  %v185_v2 = vmul.f32 %v171_v38, %v511_v17  ;;  %v186_v3 = vmul.f32 %v167_v37, %v514_v19 }
  0x79   :  { %v222_v50 = vadd.f32 %v215_v47, %v174_v44  ;;  %v223_v4 = vadd.f32 %v219_v48, %v175_v45  ;;  %v224_v51 = vadd.f32 %v215_v47, %v176_v14  ;;  %v225_v5 = vadd.f32 %v219_v48, %v177_v42 }
  0x7a   :  { %v226_v52 = vadd.f32 %v215_v47, %v178_v56  ;;  %v227_v7 = vadd.f32 %v219_v48, %v179_v43  ;;  %v228_v53 = vadd.f32 %v215_v47, %v180_v46  ;;  %v229_v54 = vadd.f32 %v219_v48, %v181_v49 }
  0x7b   :  { %238 = vst [vmem:[#allocation5] sm:$0xff] %v222_v50  ;;  %239 = vst [vmem:[#allocation5 + $0x8] sm:$0xff] %v223_v4  ;;  %v230_v9 = vadd.f32 %v215_v47, %v182_v39  ;;  %v231_v11 = vadd.f32 %v219_v48, %v183_v0  ;;  %v232_v13 = vadd.f32 %v215_v47, %v184_v1 }
  0x7c   :  { %240 = vst [vmem:[#allocation5 + $0x10] sm:$0xff] %v224_v51  ;;  %241 = vst [vmem:[#allocation5 + $0x18] sm:$0xff] %v225_v5  ;;  %v233_v15 = vadd.f32 %v219_v48, %v185_v2  ;;  %v234_v17 = vadd.f32 %v215_v47, %v186_v3  ;;  %v187_v19 = vmul.f32 %v171_v38, %v517_v21 }
  0x7d   :  { %242 = vst [vmem:[#allocation5 + $0x20] sm:$0xff] %v226_v52  ;;  %243 = vst [vmem:[#allocation5 + $0x28] sm:$0xff] %v227_v7  ;;  %v188_v55 = vmul.f32 %v167_v37, %v520_v23  ;;  %v189_v57 = vmul.f32 %v171_v38, %v523_v25 }
  0x7e   :  { %244 = vst [vmem:[#allocation5 + $0x30] sm:$0xff] %v228_v53  ;;  %245 = vst [vmem:[#allocation5 + $0x38] sm:$0xff] %v229_v54  ;;  %v235_v58 = vadd.f32 %v219_v48, %v187_v19 }
  0x7f   :  { %246 = vst [vmem:[#allocation5 + $0x40] sm:$0xff] %v230_v9  ;;  %247 = vst [vmem:[#allocation5 + $0x48] sm:$0xff] %v231_v11  ;;  %v236_v59 = vadd.f32 %v215_v47, %v188_v55  ;;  %v237_v60 = vadd.f32 %v219_v48, %v189_v57 }
  0x80   :  { %248 = vst [vmem:[#allocation5 + $0x50] sm:$0xff] %v232_v13  ;;  %249 = vst [vmem:[#allocation5 + $0x58] sm:$0xff] %v233_v15 }
  0x81   :  { %250 = vst [vmem:[#allocation5 + $0x60] sm:$0xff] %v234_v17  ;;  %251 = vst [vmem:[#allocation5 + $0x68] sm:$0xff] %v235_v58 }
  0x82   :  { %252 = vst [vmem:[#allocation5 + $0x70] sm:$0xff] %v236_v59  ;;  %253 = vst [vmem:[#allocation5 + $0x78] sm:$0xff] %v237_v60 }
  0x83   :  { %412 = shalt.err (!%p409_p0)
}
  0x84   :  { %s413_s11 = scalar_lea.hbm %s634_s3, 2048 }
  0x85   :  { %p414_p1 = scmp.ne.s32.totalorder %s634_s3, %s413_s11  ;;  %p417_p2 = scmp.lt.u32.totalorder %s413_s11, %s634_s3 }
  0x87   :  { %p419_p3 = pnand %p417_p2, %p414_p1 }
  0x89   :  { %422 = shalt.err (!%p419_p3)
}
  0x8a   :  { %289 = dma.vmem_to_hbm [thread:$0]  %s284_s5, 2048, %s634_s3, [#allocation4], %s430_s28, %s430_s28, %s431_s29  }
  0x8b   :  { %425 = dma.done.wait [#allocation4], 2048  }
  0x8c   :  { %426 = vsyncadd [#allocation4], 4294965248 }
  0x8d   :  { %427 = dma.done.wait [#allocation7], 64  }
  0x8e   :  { %428 = vsyncadd [#allocation7], 4294967232 }
  0x8f   :  { %319 = vsyncpa [#allocation3], 1 }
  0x90   :  { %320 = vsyncpa [#allocation4], 1 }
  0x91   :  { %321 = vsyncpa [#allocation7], 1 }

</bundles_post_ra>
